<compile_context>
chip_gen: v6e
topology: v6e:2x2x1
jax: 0.10.0
libtpu: 0.0.40
codegen_flags: <defaults>
</compile_context>

<pallas_src>
from functools import partial

import jax
import jax.numpy as jnp
from jax import lax
from jax.experimental import pallas as pl
from jax.experimental.pallas import tpu as pltpu

_PAD = 128  # lane-aligned zero margin on each side of the flattened image


def _resblock_kernel(x_ref, w_ref, b_ref, o_ref, xpad_ref, *, img_w):
    # x_ref   : (1, GC, HW)        activations (conv input AND residual)
    # w_ref   : (9, GC, GC)        per-tap (dy*3+dx) block-diag channel mixers
    # b_ref   : (GC, 1)            bias column (f32)
    # o_ref   : (1, GC, HW)        output
    # xpad_ref: (GC, HW + 2*_PAD)  f32 scratch; zero margins give H padding
    _, gc, hw = x_ref.shape
    padlen = xpad_ref.shape[1]
    base = _PAD
    W = img_w

    x2d = x_ref[0].astype(jnp.float32)                            # (GC, HW)

    # Zero only the two aligned pad margins (not the whole scratch); the
    # interior is fully overwritten every step.
    xpad_ref[:, :base] = jnp.zeros((gc, base), jnp.float32)
    xpad_ref[:, base + hw:] = jnp.zeros((gc, padlen - base - hw), jnp.float32)
    xpad_ref[:, base:base + hw] = x2d                  # lane-aligned store

    # Width-edge masks (height edges are handled by the zero margins).
    xcol = lax.broadcasted_iota(jnp.int32, (gc, hw), 1) % W
    mask_l = xcol >= 1            # valid lanes for dx == 0 taps
    mask_r = xcol <= W - 2        # valid lanes for dx == 2 taps

    acc = jnp.zeros((gc, hw), jnp.float32)
    for dx in range(3):                                   # static unroll (3)
        part = jnp.zeros((gc, hw), jnp.float32)
        for dy in range(3):                               # static unroll (3)
            start = base + (dy - 1) * W + (dx - 1)        # static offset
            part = part + jnp.dot(w_ref[dy * 3 + dx],
                                  xpad_ref[:, start:start + hw],
                                  preferred_element_type=jnp.float32)
        if dx == 0:
            part = jnp.where(mask_l, part, 0.0)
        elif dx == 2:
            part = jnp.where(mask_r, part, 0.0)
        acc = acc + part

    acc = acc + b_ref[...]                  # bias (broadcast over lanes)
    acc = jnp.maximum(acc, 0.0)             # ReLU            (main path)
    acc = acc + x2d                         # + Identity      (skip path)
    o_ref[0] = acc.astype(o_ref.dtype)


def residual_block_forward(x_nchw, weight_oihw, bias, cond=None,
                           images_per_step=None):
    """forward(x, cond) = ReLU(Conv2d_3x3(x) + b) + x.  NCHW in / NCHW out.

    `cond` is accepted for interface fidelity; this instantiation's submodules
    (Conv2d, ReLU, Identity) do not use it.
    """
    # TODO(synk): generic `cond`-consuming submodules (ConditionedSequential)
    # are module-dependent and not representable in this fixed instantiation.
    del cond
    N, C, H, W = x_nchw.shape
    assert weight_oihw.shape == (C, C, 3, 3)
    assert W + 1 <= _PAD, "pad margin must cover one image row"
    HW = H * W

    # Images per grid step: amortize per-step overhead, but keep >= 2 grid
    # steps when possible so v7x's 2 TensorCores both get work.
    if images_per_step is None:
        G = 1
        for g in range(1, min(N, 8) + 1):
            if N % g == 0 and N // g >= 2:
                G = g
    else:
        G = images_per_step
        assert N % G == 0
    GC = G * C

    # Pure reshape (no transpose, no HBM relayout): NCHW -> (N/G, G*C, H*W).
    x3 = x_nchw.reshape(N // G, GC, HW)

    # Per-tap channel mixers: w_k[dy, dx, co, ci] = weight[co, ci, dy, dx],
    # block-diagonalised over the G images packed into one grid step.
    w_k = jnp.transpose(weight_oihw, (2, 3, 0, 1)).astype(jnp.float32)
    eye_g = jnp.eye(G, dtype=jnp.float32)
    w_taps = jnp.stack([jnp.kron(eye_g, w_k[t // 3, t % 3])
                        for t in range(9)])                     # (9, GC, GC)

    b_col = jnp.tile(bias.astype(jnp.float32), G).reshape(GC, 1)

    cost = pl.CostEstimate(
        flops=2 * 9 * C * C * H * W * N,
        transcendentals=0,
        bytes_accessed=(2 * N * C * H * W + 9 * C * C + C)
        * x_nchw.dtype.itemsize,
    )

    out3 = pl.pallas_call(
        partial(_resblock_kernel, img_w=W),
        out_shape=jax.ShapeDtypeStruct((N // G, GC, HW), x_nchw.dtype),
        grid_spec=pltpu.PrefetchScalarGridSpec(
            num_scalar_prefetch=0,
            grid=(N // G,),
            in_specs=[
                pl.BlockSpec((1, GC, HW), lambda n: (n, 0, 0)),
                pl.BlockSpec((9, GC, GC), lambda n: (0, 0, 0)),  # invariant
                pl.BlockSpec((GC, 1), lambda n: (0, 0)),         # invariant
            ],
            out_specs=pl.BlockSpec((1, GC, HW), lambda n: (n, 0, 0)),
            scratch_shapes=[pltpu.VMEM((GC, HW + 2 * _PAD), jnp.float32)],
        ),
        compiler_params=pltpu.CompilerParams(
            dimension_semantics=("parallel",)),
        cost_estimate=cost,
    )(x3, w_taps, b_col)

    # Pure reshape back to NCHW.
    return out3.reshape(N, C, H, W)


def _reference(x_nchw, weight_oihw, bias):
    """Pure-JAX reference: ReLU(conv3x3(x) + b) + x, via lax.conv."""
    x = jnp.transpose(x_nchw, (0, 2, 3, 1))
    w_hwio = jnp.transpose(weight_oihw, (2, 3, 1, 0))
    y = lax.conv_general_dilated(
        x, w_hwio, window_strides=(1, 1), padding="SAME",
        dimension_numbers=("NHWC", "HWIO", "NHWC"))
    y = jnp.maximum(y + bias[None, None, None, :], 0.0) + x
    return jnp.transpose(y, (0, 3, 1, 2))


if __name__ == "__main__":
    key = jax.random.PRNGKey(0)
    k_x, k_w, k_b = jax.random.split(key, 3)

    N, C, H, W = 2, 4, 16, 16
    x = jax.random.normal(k_x, (N, C, H, W), dtype=jnp.float32)
    weight = jax.random.normal(k_w, (C, C, 3, 3), dtype=jnp.float32) * 0.1
    bias = jax.random.normal(k_b, (C,), dtype=jnp.float32) * 0.1

    out = residual_block_forward(x, weight, bias, cond=None)
    out = jax.block_until_ready(out)

    ref = _reference(x, weight, bias)
    assert out.shape == (N, C, H, W)
    assert jnp.allclose(out, ref, atol=1e-4, rtol=1e-4)

    print("KERNEL_OK")
</pallas_src>

<mosaic_0001>
module attributes {stable_mosaic.version = 11 : i64} {
  func.func @_resblock_kernel(%arg0: i32, %arg1: memref<1x4x256xf32, #tpu.memory_space<vmem>>, %arg2: memref<9x4x4xf32, #tpu.memory_space<vmem>>, %arg3: memref<4x1xf32, #tpu.memory_space<vmem>>, %arg4: memref<1x4x256xf32, #tpu.memory_space<vmem>>, %arg5: memref<4x512xf32, #tpu.memory_space<vmem>>) attributes {dimension_semantics = [#tpu.dimension_semantics<parallel>], iteration_bounds = array<i64: 2>, scalar_prefetch = 0 : i64, scratch_operands = 1 : i64, tpu.core_type = #tpu.core_type<tc>, window_params = [{transform_indices = @transform_0, window_bounds = array<i64: 1, 4, 256>}, {pipeline_mode = #tpu.pipeline_mode<synchronous>, transform_indices = @transform_1, window_bounds = array<i64: 9, 4, 4>}, {pipeline_mode = #tpu.pipeline_mode<synchronous>, transform_indices = @transform_2, window_bounds = array<i64: 4, 1>}, {transform_indices = @transform_3, window_bounds = array<i64: 1, 4, 256>}]} {
    %c0 = arith.constant 0 : index
    %c0_0 = arith.constant 0 : index
    %c0_1 = arith.constant 0 : index
    %0 = vector.load %arg1[%c0, %c0_0, %c0_1] : memref<1x4x256xf32, #tpu.memory_space<vmem>>, vector<1x4x256xf32>
    %1 = vector.shape_cast %0 : vector<1x4x256xf32> to vector<4x256xf32>
    %cst = arith.constant 0.000000e+00 : f32
    %2 = vector.broadcast %cst : f32 to vector<4x128xf32>
    %c0_2 = arith.constant 0 : index
    %c0_3 = arith.constant 0 : index
    %3 = vector.load %arg5[%c0_2, %c0_3] : memref<4x512xf32, #tpu.memory_space<vmem>>, vector<4x128xf32>
    tpu.vector_store %arg5[%c0_2, %c0_3], %2 {strides = array<i32>} : memref<4x512xf32, #tpu.memory_space<vmem>>, vector<4x128xf32>,
    %cst_4 = arith.constant 0.000000e+00 : f32
    %4 = vector.broadcast %cst_4 : f32 to vector<4x128xf32>
    %c0_5 = arith.constant 0 : index
    %c384 = arith.constant 384 : index
    %5 = vector.load %arg5[%c0_5, %c384] : memref<4x512xf32, #tpu.memory_space<vmem>>, vector<4x128xf32>
    tpu.vector_store %arg5[%c0_5, %c384], %4 {strides = array<i32>} : memref<4x512xf32, #tpu.memory_space<vmem>>, vector<4x128xf32>,
    %c0_6 = arith.constant 0 : index
    %c128 = arith.constant 128 : index
    %6 = vector.load %arg5[%c0_6, %c128] : memref<4x512xf32, #tpu.memory_space<vmem>>, vector<4x256xf32>
    tpu.vector_store %arg5[%c0_6, %c128], %1 {strides = array<i32>} : memref<4x512xf32, #tpu.memory_space<vmem>>, vector<4x256xf32>,
    %7 = tpu.iota {dimensions = array<i32: 1>} : vector<4x256xi32>
    %c16_i32 = arith.constant 16 : i32
    %c0_i32 = arith.constant 0 : i32
    %8 = arith.cmpi eq, %c16_i32, %c0_i32 : i32
    %c1_i32 = arith.constant 1 : i32
    %9 = arith.select %8, %c1_i32, %c16_i32 : i32
    %10 = vector.broadcast %9 : i32 to vector<4x256xi32>
    %11 = arith.remsi %7, %10 : vector<4x256xi32>
    %c0_i32_7 = arith.constant 0 : i32
    %12 = vector.broadcast %c0_i32_7 : i32 to vector<4x256xi32>
    %13 = arith.cmpi ne, %11, %12 : vector<4x256xi32>
    %c0_i32_8 = arith.constant 0 : i32
    %14 = vector.broadcast %c0_i32_8 : i32 to vector<4x256xi32>
    %15 = arith.cmpi slt, %11, %14 : vector<4x256xi32>
    %c0_i32_9 = arith.constant 0 : i32
    %16 = arith.cmpi slt, %9, %c0_i32_9 : i32
    %17 = vector.broadcast %16 : i1 to vector<4x256xi1>
    %18 = vector.broadcast %17 : vector<4x256xi1> to vector<4x256xi1>
    %19 = arith.xori %15, %18 : vector<4x256xi1>
    %20 = arith.andi %19, %13 : vector<4x256xi1>
    %21 = vector.broadcast %9 : i32 to vector<4x256xi32>
    %22 = arith.addi %11, %21 : vector<4x256xi32>
    %23 = arith.select %20, %22, %11 : vector<4x256xi1>, vector<4x256xi32>
    %c1_i32_10 = arith.constant 1 : i32
    %24 = vector.broadcast %c1_i32_10 : i32 to vector<4x256xi32>
    %25 = arith.cmpi sge, %23, %24 : vector<4x256xi32>
    %c14_i32 = arith.constant 14 : i32
    %26 = vector.broadcast %c14_i32 : i32 to vector<4x256xi32>
    %27 = arith.cmpi sle, %23, %26 : vector<4x256xi32>
    %cst_11 = arith.constant 0.000000e+00 : f32
    %28 = vector.broadcast %cst_11 : f32 to vector<4x256xf32>
    %cst_12 = arith.constant 0.000000e+00 : f32
    %29 = vector.broadcast %cst_12 : f32 to vector<4x256xf32>
    %c0_13 = arith.constant 0 : index
    %c0_14 = arith.constant 0 : index
    %c0_15 = arith.constant 0 : index
    %30 = vector.load %arg2[%c0_13, %c0_14, %c0_15] : memref<9x4x4xf32, #tpu.memory_space<vmem>>, vector<1x4x4xf32>
    %31 = vector.shape_cast %30 : vector<1x4x4xf32> to vector<4x4xf32>
    %c0_16 = arith.constant 0 : index
    %c111 = arith.constant 111 : index
    %32 = vector.load %arg5[%c0_16, %c111] : memref<4x512xf32, #tpu.memory_space<vmem>>, vector<4x256xf32>
    %cst_17 = arith.constant dense<0.000000e+00> : vector<4x256xf32>
    %33 = tpu.matmul %31, %32, %cst_17 {dimension_numbers = #tpu.dot_dimension_numbers<[1], [0], [0], [1], [0, 0, 1, 1], [], []>} : vector<4x4xf32>, vector<4x256xf32>, vector<4x256xf32> -> vector<4x256xf32>
    %34 = arith.addf %29, %33 : vector<4x256xf32>
    %c3 = arith.constant 3 : index
    %c0_18 = arith.constant 0 : index
    %c0_19 = arith.constant 0 : index
    %35 = vector.load %arg2[%c3, %c0_18, %c0_19] : memref<9x4x4xf32, #tpu.memory_space<vmem>>, vector<1x4x4xf32>
    %36 = vector.shape_cast %35 : vector<1x4x4xf32> to vector<4x4xf32>
    %c0_20 = arith.constant 0 : index
    %c127 = arith.constant 127 : index
    %37 = vector.load %arg5[%c0_20, %c127] : memref<4x512xf32, #tpu.memory_space<vmem>>, vector<4x256xf32>
    %cst_21 = arith.constant dense<0.000000e+00> : vector<4x256xf32>
    %38 = tpu.matmul %36, %37, %cst_21 {dimension_numbers = #tpu.dot_dimension_numbers<[1], [0], [0], [1], [0, 0, 1, 1], [], []>} : vector<4x4xf32>, vector<4x256xf32>, vector<4x256xf32> -> vector<4x256xf32>
    %39 = arith.addf %34, %38 : vector<4x256xf32>
    %c6 = arith.constant 6 : index
    %c0_22 = arith.constant 0 : index
    %c0_23 = arith.constant 0 : index
    %40 = vector.load %arg2[%c6, %c0_22, %c0_23] : memref<9x4x4xf32, #tpu.memory_space<vmem>>, vector<1x4x4xf32>
    %41 = vector.shape_cast %40 : vector<1x4x4xf32> to vector<4x4xf32>
    %c0_24 = arith.constant 0 : index
    %c143 = arith.constant 143 : index
    %42 = vector.load %arg5[%c0_24, %c143] : memref<4x512xf32, #tpu.memory_space<vmem>>, vector<4x256xf32>
    %cst_25 = arith.constant dense<0.000000e+00> : vector<4x256xf32>
    %43 = tpu.matmul %41, %42, %cst_25 {dimension_numbers = #tpu.dot_dimension_numbers<[1], [0], [0], [1], [0, 0, 1, 1], [], []>} : vector<4x4xf32>, vector<4x256xf32>, vector<4x256xf32> -> vector<4x256xf32>
    %44 = arith.addf %39, %43 : vector<4x256xf32>
    %cst_26 = arith.constant 0.000000e+00 : f32
    %45 = vector.broadcast %cst_26 : f32 to vector<4x256xf32>
    %46 = arith.select %25, %44, %45 : vector<4x256xi1>, vector<4x256xf32>
    %47 = arith.addf %28, %46 : vector<4x256xf32>
    %cst_27 = arith.constant 0.000000e+00 : f32
    %48 = vector.broadcast %cst_27 : f32 to vector<4x256xf32>
    %c1 = arith.constant 1 : index
    %c0_28 = arith.constant 0 : index
    %c0_29 = arith.constant 0 : index
    %49 = vector.load %arg2[%c1, %c0_28, %c0_29] : memref<9x4x4xf32, #tpu.memory_space<vmem>>, vector<1x4x4xf32>
    %50 = vector.shape_cast %49 : vector<1x4x4xf32> to vector<4x4xf32>
    %c0_30 = arith.constant 0 : index
    %c112 = arith.constant 112 : index
    %51 = vector.load %arg5[%c0_30, %c112] : memref<4x512xf32, #tpu.memory_space<vmem>>, vector<4x256xf32>
    %cst_31 = arith.constant dense<0.000000e+00> : vector<4x256xf32>
    %52 = tpu.matmul %50, %51, %cst_31 {dimension_numbers = #tpu.dot_dimension_numbers<[1], [0], [0], [1], [0, 0, 1, 1], [], []>} : vector<4x4xf32>, vector<4x256xf32>, vector<4x256xf32> -> vector<4x256xf32>
    %53 = arith.addf %48, %52 : vector<4x256xf32>
    %c4 = arith.constant 4 : index
    %c0_32 = arith.constant 0 : index
    %c0_33 = arith.constant 0 : index
    %54 = vector.load %arg2[%c4, %c0_32, %c0_33] : memref<9x4x4xf32, #tpu.memory_space<vmem>>, vector<1x4x4xf32>
    %55 = vector.shape_cast %54 : vector<1x4x4xf32> to vector<4x4xf32>
    %c0_34 = arith.constant 0 : index
    %c128_35 = arith.constant 128 : index
    %56 = vector.load %arg5[%c0_34, %c128_35] : memref<4x512xf32, #tpu.memory_space<vmem>>, vector<4x256xf32>
    %cst_36 = arith.constant dense<0.000000e+00> : vector<4x256xf32>
    %57 = tpu.matmul %55, %56, %cst_36 {dimension_numbers = #tpu.dot_dimension_numbers<[1], [0], [0], [1], [0, 0, 1, 1], [], []>} : vector<4x4xf32>, vector<4x256xf32>, vector<4x256xf32> -> vector<4x256xf32>
    %58 = arith.addf %53, %57 : vector<4x256xf32>
    %c7 = arith.constant 7 : index
    %c0_37 = arith.constant 0 : index
    %c0_38 = arith.constant 0 : index
    %59 = vector.load %arg2[%c7, %c0_37, %c0_38] : memref<9x4x4xf32, #tpu.memory_space<vmem>>, vector<1x4x4xf32>
    %60 = vector.shape_cast %59 : vector<1x4x4xf32> to vector<4x4xf32>
    %c0_39 = arith.constant 0 : index
    %c144 = arith.constant 144 : index
    %61 = vector.load %arg5[%c0_39, %c144] : memref<4x512xf32, #tpu.memory_space<vmem>>, vector<4x256xf32>
    %cst_40 = arith.constant dense<0.000000e+00> : vector<4x256xf32>
    %62 = tpu.matmul %60, %61, %cst_40 {dimension_numbers = #tpu.dot_dimension_numbers<[1], [0], [0], [1], [0, 0, 1, 1], [], []>} : vector<4x4xf32>, vector<4x256xf32>, vector<4x256xf32> -> vector<4x256xf32>
    %63 = arith.addf %58, %62 : vector<4x256xf32>
    %64 = arith.addf %47, %63 : vector<4x256xf32>
    %cst_41 = arith.constant 0.000000e+00 : f32
    %65 = vector.broadcast %cst_41 : f32 to vector<4x256xf32>
    %c2 = arith.constant 2 : index
    %c0_42 = arith.constant 0 : index
    %c0_43 = arith.constant 0 : index
    %66 = vector.load %arg2[%c2, %c0_42, %c0_43] : memref<9x4x4xf32, #tpu.memory_space<vmem>>, vector<1x4x4xf32>
    %67 = vector.shape_cast %66 : vector<1x4x4xf32> to vector<4x4xf32>
    %c0_44 = arith.constant 0 : index
    %c113 = arith.constant 113 : index
    %68 = vector.load %arg5[%c0_44, %c113] : memref<4x512xf32, #tpu.memory_space<vmem>>, vector<4x256xf32>
    %cst_45 = arith.constant dense<0.000000e+00> : vector<4x256xf32>
    %69 = tpu.matmul %67, %68, %cst_45 {dimension_numbers = #tpu.dot_dimension_numbers<[1], [0], [0], [1], [0, 0, 1, 1], [], []>} : vector<4x4xf32>, vector<4x256xf32>, vector<4x256xf32> -> vector<4x256xf32>
    %70 = arith.addf %65, %69 : vector<4x256xf32>
    %c5 = arith.constant 5 : index
    %c0_46 = arith.constant 0 : index
    %c0_47 = arith.constant 0 : index
    %71 = vector.load %arg2[%c5, %c0_46, %c0_47] : memref<9x4x4xf32, #tpu.memory_space<vmem>>, vector<1x4x4xf32>
    %72 = vector.shape_cast %71 : vector<1x4x4xf32> to vector<4x4xf32>
    %c0_48 = arith.constant 0 : index
    %c129 = arith.constant 129 : index
    %73 = vector.load %arg5[%c0_48, %c129] : memref<4x512xf32, #tpu.memory_space<vmem>>, vector<4x256xf32>
    %cst_49 = arith.constant dense<0.000000e+00> : vector<4x256xf32>
    %74 = tpu.matmul %72, %73, %cst_49 {dimension_numbers = #tpu.dot_dimension_numbers<[1], [0], [0], [1], [0, 0, 1, 1], [], []>} : vector<4x4xf32>, vector<4x256xf32>, vector<4x256xf32> -> vector<4x256xf32>
    %75 = arith.addf %70, %74 : vector<4x256xf32>
    %c8 = arith.constant 8 : index
    %c0_50 = arith.constant 0 : index
    %c0_51 = arith.constant 0 : index
    %76 = vector.load %arg2[%c8, %c0_50, %c0_51] : memref<9x4x4xf32, #tpu.memory_space<vmem>>, vector<1x4x4xf32>
    %77 = vector.shape_cast %76 : vector<1x4x4xf32> to vector<4x4xf32>
    %c0_52 = arith.constant 0 : index
    %c145 = arith.constant 145 : index
    %78 = vector.load %arg5[%c0_52, %c145] : memref<4x512xf32, #tpu.memory_space<vmem>>, vector<4x256xf32>
    %cst_53 = arith.constant dense<0.000000e+00> : vector<4x256xf32>
    %79 = tpu.matmul %77, %78, %cst_53 {dimension_numbers = #tpu.dot_dimension_numbers<[1], [0], [0], [1], [0, 0, 1, 1], [], []>} : vector<4x4xf32>, vector<4x256xf32>, vector<4x256xf32> -> vector<4x256xf32>
    %80 = arith.addf %75, %79 : vector<4x256xf32>
    %cst_54 = arith.constant 0.000000e+00 : f32
    %81 = vector.broadcast %cst_54 : f32 to vector<4x256xf32>
    %82 = arith.select %27, %80, %81 : vector<4x256xi1>, vector<4x256xf32>
    %83 = arith.addf %64, %82 : vector<4x256xf32>
    %c0_55 = arith.constant 0 : index
    %c0_56 = arith.constant 0 : index
    %84 = vector.load %arg3[%c0_55, %c0_56] : memref<4x1xf32, #tpu.memory_space<vmem>>, vector<4x1xf32>
    %85 = vector.broadcast %84 : vector<4x1xf32> to vector<4x256xf32>
    %86 = arith.addf %83, %85 : vector<4x256xf32>
    %cst_57 = arith.constant 0.000000e+00 : f32
    %87 = vector.broadcast %cst_57 : f32 to vector<4x256xf32>
    %88 = arith.maximumf %86, %87 : vector<4x256xf32>
    %89 = arith.addf %88, %1 : vector<4x256xf32>
    %c0_58 = arith.constant 0 : index
    %c0_59 = arith.constant 0 : index
    %c0_60 = arith.constant 0 : index
    %90 = vector.load %arg4[%c0_58, %c0_59, %c0_60] : memref<1x4x256xf32, #tpu.memory_space<vmem>>, vector<1x4x256xf32>
    %91 = vector.shape_cast %90 : vector<1x4x256xf32> to vector<4x256xf32>
    %92 = vector.shape_cast %89 : vector<4x256xf32> to vector<1x4x256xf32>
    tpu.vector_store %arg4[%c0_58, %c0_59, %c0_60], %92 {strides = array<i32>} : memref<1x4x256xf32, #tpu.memory_space<vmem>>, vector<1x4x256xf32>,
    return
  }
  func.func @transform_0(%arg0: i32) -> (i32, i32, i32) {
    %c0_i32 = arith.constant 0 : i32
    %c0_i32_0 = arith.constant 0 : i32
    %c0_i32_1 = arith.constant 0 : i32
    return %arg0, %c0_i32, %c0_i32_0 : i32, i32, i32
  }
  func.func @transform_1(%arg0: i32) -> (i32, i32, i32) {
    %c0_i32 = arith.constant 0 : i32
    %c0_i32_0 = arith.constant 0 : i32
    %c0_i32_1 = arith.constant 0 : i32
    %c0_i32_2 = arith.constant 0 : i32
    return %c0_i32, %c0_i32_0, %c0_i32_1 : i32, i32, i32
  }
  func.func @transform_2(%arg0: i32) -> (i32, i32) {
    %c0_i32 = arith.constant 0 : i32
    %c0_i32_0 = arith.constant 0 : i32
    %c0_i32_1 = arith.constant 0 : i32
    return %c0_i32, %c0_i32_0 : i32, i32
  }
  func.func @transform_3(%arg0: i32) -> (i32, i32, i32) {
    %c0_i32 = arith.constant 0 : i32
    %c0_i32_0 = arith.constant 0 : i32
    %c0_i32_1 = arith.constant 0 : i32
    return %arg0, %c0_i32, %c0_i32_0 : i32, i32, i32
  }
}

</mosaic_0001>

<bundles_post_ra>
// kernel: tpu_custom_call.1
= control target key start
LH: loop header
LB: loop body
LE: loop exit
PB: predicated region body
PF: predicated region fallthrough
CT: control target
= control target key end

     0   :  { %8 = vsyncpa [#allocation4], 0  ;;  %s1519_s0 = inlined_call_operand.vmem [shape: f32[2,4,256], index: 0, kind: input, shape index: {}]   ;;  %s1520_s1 = inlined_call_operand.vmem [shape: f32[9,4,4], index: 1, kind: input, shape index: {}]   ;;  %s1521_s2 = inlined_call_operand.vmem [shape: f32[4,1], index: 2, kind: input, shape index: {}]   ;;  %s1522_s3 = inlined_call_operand.hbm [shape: f32[2,4,256], index: 3, kind: output, shape index: {}]  }
   0x1   :  { %10 = vsyncpa [#allocation4 + $0x1], 0  ;;  %s1339_s12 = smov 0   ;;  %s1341_s13 = smov 0  }
   0x2   :  { %s1343_s14 = smov 0   ;;  %s1345_s15 = smov 0  }
   0x3 LB: > { %s1360_s16 = sadd.s32 4294967295, %s1306_s15   ;;  %s1145_s17 = sadd.s32 4294967294, %s1306_s15   ;;  %s1306_s15 = sphi %s1345_s15, %s1530_s15   ;;  %s1302_s14 = sphi %s1343_s14, %s1529_s14   ;;  %s1298_s13 = sphi %s1341_s13, %s1528_s13   ;;  %s1294_s12 = sphi %s1339_s12, %s1527_s12  }
   0x4   : > { %s1364_s18 = sadd.s32 1, %s1306_s15   ;;  %s91_s19 = sadd.s32 1, %s1302_s14 }
   0x5   : > { %s88_s20 = ssub.s32 %s1306_s15, %s1364_s18  ;;  %p101_p0 = scmp.ne.s32.totalorder %s1302_s14, %s1298_s13 }
   0x6   : > { %p89_p1 = scmp.eq.s32.totalorder %s88_s20, 0  ;;  %p102_p2 = scmp.eq.s32.totalorder %s1360_s16, 1 }
   0x7   : > { %p107_p3 = scmp.ne.s32.totalorder %s1298_s13, %s1294_s12  ;;  %p108_p4 = scmp.eq.s32.totalorder %s1145_s17, 1 }
   0x8   : > { %s1375_s21 = scalar_select %p89_p1, %s1302_s14, %s91_s19  }
   0x9   : > { %p1377_p5 = por %p102_p2, %p101_p0  ;;  %p1381_p6 = por %p108_p4, %p107_p3 }
   0xa   : > { %p1148_p7 = scmp.ge.s32.totalorder %s1306_s15, 1  ;;  %p140_p8 = scmp.lt.s32.totalorder %s1306_s15, 3 }
   0xc   : > { %p141_p9 = pnand %p1148_p7, %p140_p8 }
   0xd   : > { %p164_p10 = scmp.lt.s32.totalorder (!%p141_p9), %s1360_s16, 1  ;;  %s1309_s29 = smov (!%p141_p9), 113  }
   0xe   : > { %144 = sbr.rel (%p141_p9) target bundleno = 415 (0x19f), region = 32  ;;  %s1310_s30 = smov (!%p141_p9), 1  }
   0xf   : > { %s1311_s4 = smov (!%p141_p9), 17   ;;  %s1312_s5 = smov (!%p141_p9), 16  }
  0x10   : > { %s1313_s6 = smov (!%p141_p9), 112   ;;  %s1314_s7 = smov (!%p141_p9), 127  }
  0x11   : > { %s1315_s8 = smov (!%p141_p9), 15   ;;  %s1317_s9 = smov (!%p141_p9), 111  }
  0x12   : > { %s161_s17 = sand.u32 (!%p141_p9), 1, %s1298_s13   ;;  %s1193_s20 = sshll.u32 (!%p141_p9), %s1360_s16, 7 }
  0x13   : > { %v1308_v0 = vmov 0.0   ;;  %s165_s24 = scalar_select %p164_p10, %s1360_s16, 1  ;;  %v1316_v11 = vmov 0   ;;  %v1051_v13 = vld [vmem:[%s1521_s2] sm:$0xf]  ;;  %vm307_vm0 = vcmask 138240  }
  0x14   : > { %171 = vst [vmem:[#allocation2 + $0xc] sm:$0xf] %v1308_v0  ;;  %170 = vst [vmem:[#allocation2] sm:$0xf] %v1308_v0  ;;  %294 = vmatprep.mubr.f32.mxu0 %v1308_v0  ;;  %381 = vmatprep.mubr.f32.mxu1 %v1308_v0  ;;  %vm225_vm1 = vcmask 1043456   ;;  %vm218_vm2 = vcmask 7168  }
  0x15   : > { %s1192_s25 = sshll.u32 %s165_s24, 3  ;;  %1243 = vset.pattern.permute.xlu0 %v1316_v11  ;;  %v204_v23 = vld [vmem:[%s1520_s1] sm:$0xf]  ;;  %vm221_vm3 = vcmask 31744   ;;  %v1152_v28 = vld [vmem:[%s1520_s1 + $0xc] sm:$0xf] }
  0x16   : > { %s168_s28 = scalar_lea.vmem %s1519_s0, %s1192_s25  ;;  %v1164_v29 = vld [vmem:[%s1520_s1 + $0x10] sm:$0xf]  ;;  %vm401_vm4 = vcmask 924672   ;;  %v1159_v34 = vld [vmem:[%s1520_s1 + $0x18] sm:$0xf]  ;;  %vm584_vm5 = vcmask 130048  }
  0x17   : > { %v1396_v1 = vld [vmem:[%s168_s28] sm:$0xff]  ;;  %vm678_vm6 = vcmask 916480   ;;  %v1171_v45 = vld [vmem:[%s1520_s1 + $0x1c] sm:$0xf]  ;;  %vm780_vm7 = vcmask 1039360   ;;  %vm870_vm8 = vcmask 121856   ;;  %s1084_s28 = scalar_lea.hbm %s1522_s3, %s1193_s20 }
  0x18   : > { %172 = vst [vmem:[#allocation2 + $0x4] sm:$0xff] %v1396_v1  ;;  %v1402_v6 = vcombine.high %v1396_v1, %v1396_v1  ;;  %v1163_v38 = vld [vmem:[%s1520_s1 + $0x4] sm:$0xf]  ;;  %v1176_v50 = vld [vmem:[%s1520_s1 + $0x14] sm:$0xf]  ;;  %vm964_vm9 = vcmask 908288  }
  0x19   : > { %v1175_v56 = vld [vmem:[%s1520_s1 + $0x8] sm:$0xf]  ;;  %v1183_v61 = vld [vmem:[%s1520_s1 + $0x20] sm:$0xf]  ;;  %s1149_s19 = sshll.u32 %s161_s17, 3  ;;  %s1318_s16 = smov [#allocation3]  }
  0x1a   : > { %s163_s24 = scalar_lea.vmem [#allocation3], %s1149_s19 }
  0x1b   : > { %v391_v2 = vld [vmem:[#allocation2 + $0xc] sm:$0xf]  ;;  %s1086_s25 = sshll.u32 %s163_s24, 4  ;;  %s1087_s25 = int_to_ptr.vmem [resolvable:$true] %s1086_s25 }
  0x1c   : > { %399 = vrot.lane.b32.xlu1 %v391_v2, %s1309_s29  ;;  %v668_v8 = vld [vmem:[#allocation2 + $0xc] sm:$0xf] }
  0x1d   : > { %v770_v9 = vld [vmem:[#allocation2 + $0xc] sm:$0xf] }
  0x1e   : > { %v954_v12 = vld [vmem:[#allocation2 + $0xc] sm:$0xf] }
  0x1f   : > { %v206_v3 = vld [vmem:[#allocation2 + $0x8] sm:$0xf]  ;;  %v205_v4 = vld [vmem:[#allocation2] sm:$0xff] }
  0x20   : > { %216 = vrot.lane.b32.xlu0 %v206_v3, %s1310_s30  ;;  %212 = vrot.lane.b32.xlu1 %v205_v4, %s1310_s30  ;;  %v211_v5 = vcombine.high %v205_v4, %v205_v4  ;;  %v491_v7 = vld [vmem:[#allocation2 + $0x8] sm:$0xf] }
  0x21   : > { %v766_v10 = vld [vmem:[#allocation2 + $0x8] sm:$0xf] }
  0x24   : > { %305 = vrot.lane.b32.xlu0 %v206_v3, %s1311_s4  ;;  %301 = vrot.lane.b32.xlu1 %v205_v4, %s1311_s4 }
  0x28   : > { %395 = vrot.lane.b32.xlu0 %v1396_v1, %s1309_s29  ;;  %303 = vrot.lane.b32.xlu1 %v211_v5, %s1311_s4  ;;  %s1250_s4 = sshll.u32 %s1318_s16, 4  ;;  %s1251_s4 = int_to_ptr.vmem [resolvable:$false] %s1250_s4 }
  0x29   : > { %p1253_p0 = scmp.lt.s32.totalorder %s1087_s25, %s1251_s4 }
  0x2c   : > { %214 = vrot.lane.b32.xlu0 %v211_v5, %s1310_s30  ;;  %580 = vrot.lane.b32.xlu1 %v211_v5, %s1312_s5  ;;  %s1246_s30 = scalar_lea.vmem %s1087_s25, 128 }
  0x2d   : > { %p1247_p11 = scmp.ne.s32.totalorder %s1087_s25, %s1246_s30 }
  0x2f   : > { %p1248_p12 = pnand %p1247_p11, %p1377_p5 }
  0x30   : > { %397 = vrot.lane.b32.xlu0 %v1402_v6, %s1309_s29  ;;  %578 = vrot.lane.b32.xlu1 %v205_v4, %s1312_s5  ;;  %s1072_s29 = scalar_lea.sflag [#allocation4], %s161_s17 }
  0x31   : > { %p1249_p13 = pneg %p1248_p12 }
  0x34   : > { %582 = vrot.lane.b32.xlu0 %v491_v7, %s1312_s5  ;;  %676 = vrot.lane.b32.xlu1 %v668_v8, %s1313_s6  ;;  %v173_v7 = vlaneseq  ;;  %s1252_s5 = scalar_lea.vmem %s1251_s4, 256 }
  0x35   : > { %p1254_p1 = scmp.lt.s32.totalorder %s1252_s5, %s1246_s30 }
  0x37   : > { %p1255_p2 = por %p1254_p1, %p1253_p0 }
  0x38   : > { %674 = vrot.lane.b32.xlu0 %v1402_v6, %s1313_s6  ;;  %776 = vrot.lane.b32.xlu1 %v1402_v6, %s1314_s7 }
  0x39   : > { %p1256_p3 = pnand %p1255_p2, %p1249_p13 }
  0x3c   : > { %672 = vrot.lane.b32.xlu0 %v1396_v1, %s1313_s6  ;;  %774 = vrot.lane.b32.xlu1 %v1396_v1, %s1314_s7 }
  0x40   : > { %778 = vrot.lane.b32.xlu0 %v770_v9, %s1314_s7  ;;  %868 = vrot.lane.b32.xlu1 %v766_v10, %s1315_s8  ;;  %v174_v10 = vand.u32 127, %v173_v7 }
  0x44   : > { %866 = vrot.lane.b32.xlu0 %v211_v5, %s1315_s8  ;;  %960 = vrot.lane.b32.xlu1 %v1402_v6, %s1317_s9 }
  0x48   : > { %864 = vrot.lane.b32.xlu0 %v205_v4, %s1315_s8  ;;  %958 = vrot.lane.b32.xlu1 %v1396_v1, %s1317_s9 }
  0x4c   : > { %962 = vrot.lane.b32.xlu0 %v954_v12, %s1317_s9 }
  0x50   : > { %1054 = vperm.xlu0 %1243, %v1051_v13   ;;  %v175_v13 = vadd.s32 128, %v174_v10 }
  0x8e   : > { %v400_v14 = vpop.permute.xlu1 %399 }
  0x92   : > { %v217_v15 = vpop.permute.xlu0 %216  ;;  %v213_v16 = vpop.permute.xlu1 %212 }
  0x96   : > { %v306_v17 = vpop.permute.xlu0 %305  ;;  %v302_v18 = vpop.permute.xlu1 %301 }
  0x9a   : > { %v396_v19 = vpop.permute.xlu0 %395  ;;  %v304_v20 = vpop.permute.xlu1 %303 }
  0x9b   : > { %v309_v21 = vsel %vm307_vm0, %v304_v20, %v306_v17  ;;  %v308_v22 = vsel %vm307_vm0, %v302_v18, %v304_v20 }
  0x9c   : > { %1156 = vmatprep.subr.msk.mxu1 %vm225_vm1, %v309_v21 }
  0x9d   : > { %1157 = vmatpush1.msk.msra.mxu1 %vm225_vm1, %v308_v22 }
  0x9e   : > { %v215_v24 = vpop.permute.xlu0 %214  ;;  %v581_v25 = vpop.permute.xlu1 %580  ;;  %1165 = vmatprep.subr.msk.mxu1 %vm225_vm1, %v1402_v6  ;;  %1158 = vmatmul.mubr.msk.f32.vlgmr.msra.gmra.mxu1 %vm221_vm3, %v204_v23 }
  0x9f   : > { %v220_v26 = vsel %vm218_vm2, %v215_v24, %v217_v15  ;;  %v219_v27 = vsel %vm218_vm2, %v213_v16, %v215_v24  ;;  %1166 = vmatpush1.msk.msra.mxu1 %vm225_vm1, %v1396_v1  ;;  %568 = vmatprep.mubr.f32.mxu1 %v1308_v0  ;;  %v180_v15 = vand.u32 15, %v174_v10 }
  0xa0   : > { %1153 = vmatprep.subr.msk.mxu0 %vm225_vm1, %v220_v26 }
  0xa1   : > { %1154 = vmatpush1.msk.msra.mxu0 %vm225_vm1, %v219_v27  ;;  %vm200_vm10 = vcmp.ge.s32.totalorder %v180_v15, 1  ;;  %vm202_vm12 = vcmp.le.s32.totalorder %v180_v15, 14 }
  0xa2   : > { %v398_v30 = vpop.permute.xlu0 %397  ;;  %v579_v31 = vpop.permute.xlu1 %578  ;;  %1155 = vmatmul.mubr.msk.f32.vlgmr.msra.gmra.mxu0 %vm221_vm3, %v1152_v28  ;;  %1167 = vmatmul.mubr.msk.f32.vlgmr.msra.gmra.mxu1 %vm221_vm3, %v1164_v29 }
  0xa3   : > { %v402_v32 = vsel %vm401_vm4, %v396_v19, %v398_v30  ;;  %v403_v33 = vsel %vm401_vm4, %v398_v30, %v400_v14  ;;  %475 = vmatprep.mubr.f32.mxu0 %v1308_v0  ;;  %752 = vmatprep.mubr.f32.mxu1 %v1308_v0  ;;  %v585_v39 = vsel %vm584_vm5, %v579_v31, %v581_v25  ;;  %v187_v19 = vand.u32 15, %v175_v13 }
  0xa4   : > { %1160 = vmatprep.subr.msk.mxu0 %vm225_vm1, %v403_v33 }
  0xa5   : > { %1161 = vmatpush1.msk.msra.mxu0 %vm225_vm1, %v402_v32  ;;  %vm1477_vm11 = vcmp.ge.s32.totalorder %v187_v19, 1  ;;  %vm203_vm13 = vcmp.le.s32.totalorder %v187_v19, 14 }
  0xa6   : > { %v583_v35 = vpop.permute.xlu0 %582  ;;  %v677_v36 = vpop.permute.xlu1 %676  ;;  %1162 = vmatmul.mubr.msk.f32.vlgmr.msra.gmra.mxu0 %vm221_vm3, %v1159_v34 }
  0xa7   : > { %v586_v37 = vsel %vm584_vm5, %v581_v25, %v583_v35  ;;  %658 = vmatprep.mubr.f32.mxu0 %v1308_v0 }
  0xa8   : > { %1168 = vmatprep.subr.msk.mxu0 %vm225_vm1, %v586_v37 }
  0xa9   : > { %1169 = vmatpush1.msk.msra.mxu0 %vm225_vm1, %v585_v39 }
  0xaa   : > { %v675_v40 = vpop.permute.xlu0 %674  ;;  %v777_v41 = vpop.permute.xlu1 %776  ;;  %1170 = vmatmul.mubr.msk.f32.vlgmr.msra.gmra.mxu0 %vm221_vm3, %v1163_v38 }
  0xab   : > { %v680_v42 = vsel %vm678_vm6, %v675_v40, %v677_v36  ;;  %854 = vmatprep.mubr.f32.mxu0 %v1308_v0 }
  0xac   : > { %1172 = vmatprep.subr.msk.mxu1 %vm225_vm1, %v680_v42 }
  0xae   : > { %v673_v43 = vpop.permute.xlu0 %672  ;;  %v775_v44 = vpop.permute.xlu1 %774 }
  0xaf   : > { %v679_v46 = vsel %vm678_vm6, %v673_v43, %v675_v40  ;;  %v781_v51 = vsel %vm780_vm7, %v775_v44, %v777_v41 }
  0xb0   : > { %1173 = vmatpush1.msk.msra.mxu1 %vm225_vm1, %v679_v46 }
  0xb1   : > { %1174 = vmatmul.mubr.msk.f32.vlgmr.msra.gmra.mxu1 %vm221_vm3, %v1171_v45 }
  0xb2   : > { %v779_v47 = vpop.permute.xlu0 %778  ;;  %v869_v48 = vpop.permute.xlu1 %868  ;;  %944 = vmatprep.mubr.f32.mxu1 %v1308_v0 }
  0xb3   : > { %v782_v49 = vsel %vm780_vm7, %v777_v41, %v779_v47 }
  0xb4   : > { %1177 = vmatprep.subr.msk.mxu0 %vm225_vm1, %v782_v49 }
  0xb5   : > { %1178 = vmatpush1.msk.msra.mxu0 %vm225_vm1, %v781_v51 }
  0xb6   : > { %v867_v52 = vpop.permute.xlu0 %866  ;;  %1179 = vmatmul.mubr.msk.f32.vlgmr.msra.gmra.mxu0 %vm221_vm3, %v1176_v50  ;;  %v961_v54 = vpop.permute.xlu1 %960 }
  0xb7   : > { %v872_v53 = vsel %vm870_vm8, %v867_v52, %v869_v48  ;;  %1038 = vmatprep.mubr.f32.mxu0 %v1308_v0 }
  0xb8   : > { %1180 = vmatprep.subr.msk.mxu1 %vm225_vm1, %v872_v53 }
  0xba   : > { %v865_v55 = vpop.permute.xlu0 %864  ;;  %v959_v58 = vpop.permute.xlu1 %958 }
  0xbb   : > { %v871_v57 = vsel %vm870_vm8, %v865_v55, %v867_v52  ;;  %v965_v62 = vsel %vm964_vm9, %v959_v58, %v961_v54 }
  0xbc   : > { %1181 = vmatpush1.msk.msra.mxu1 %vm225_vm1, %v871_v57 }
  0xbd   : > { %1182 = vmatmul.mubr.msk.f32.vlgmr.msra.gmra.mxu1 %vm221_vm3, %v1175_v56 }
  0xbe   : > { %v963_v59 = vpop.permute.xlu0 %962 }
  0xbf   : > { %v966_v60 = vsel %vm964_vm9, %v961_v54, %v963_v59 }
  0xc0   : > { %1184 = vmatprep.subr.msk.mxu0 %vm225_vm1, %v966_v60 }
  0xc1   : > { %1185 = vmatpush1.msk.msra.mxu0 %vm225_vm1, %v965_v62 }
  0xc2   : > { %1186 = vmatmul.mubr.msk.f32.vlgmr.msra.gmra.mxu0 %vm221_vm3, %v1183_v61 }
  0xcb   : > { %v1055_v41 = vpop.permute.xlu0 %1054 }
 0x15e   : > { %v383_v0 = vpop.f32.mrf.mxu1 }
 0x160   : > { %v385_v3 = vpop.f32.mrf.mxu1 }
 0x162   : > { %v296_v63 = vpop.f32.mrf.mxu0  ;;  %v570_v5 = vpop.f32.mrf.mxu1 }
 0x163   : > { %v384_v14 = vadd.f32 %v383_v0, %v296_v63 }
 0x164   : > { %v298_v2 = vpop.f32.mrf.mxu0  ;;  %v572_v9 = vpop.f32.mrf.mxu1 }
 0x165   : > { %v386_v17 = vadd.f32 %v385_v3, %v298_v2 }
 0x166   : > { %v477_v4 = vpop.f32.mrf.mxu0 }
 0x167   : > { %v482_v22 = vadd.f32 %v477_v4, %v384_v14 }
 0x168   : > { %v479_v8 = vpop.f32.mrf.mxu0 }
 0x169   : > { %v483_v25 = vadd.f32 %v479_v8, %v386_v17  ;;  %v484_v30 = vsel %vm200_vm10, %v482_v22, 0.0 }
 0x16a   : > { %v660_v11 = vpop.f32.mrf.mxu0 }
 0x16b   : > { %v661_v20 = vadd.f32 %v660_v11, %v570_v5  ;;  %v485_v34 = vsel %vm1477_vm11, %v483_v25, 0.0 }
 0x16c   : > { %v662_v16 = vpop.f32.mrf.mxu0 }
 0x16d   : > { %v663_v24 = vadd.f32 %v662_v16, %v572_v9 }
 0x171   : > { %v754_v12 = vpop.f32.mrf.mxu1 }
 0x172   : > { %v759_v27 = vadd.f32 %v754_v12, %v661_v20 }
 0x173   : > { %v756_v18 = vpop.f32.mrf.mxu1 }
 0x174   : > { %v760_v32 = vadd.f32 %v756_v18, %v663_v24  ;;  %v761_v37 = vadd.f32 %v759_v27, %v484_v30 }
 0x176   : > { %v856_v21 = vpop.f32.mrf.mxu0  ;;  %v762_v42 = vadd.f32 %v760_v32, %v485_v34 }
 0x178   : > { %v858_v28 = vpop.f32.mrf.mxu0 }
 0x17d   : > { %v946_v23 = vpop.f32.mrf.mxu1 }
 0x17e   : > { %v947_v31 = vadd.f32 %v946_v23, %v856_v21 }
 0x17f   : > { %v948_v29 = vpop.f32.mrf.mxu1 }
 0x180   : > { %v949_v35 = vadd.f32 %v948_v29, %v858_v28 }
 0x182   : > { %v1040_v33 = vpop.f32.mrf.mxu0 }
 0x183   : > { %v1045_v36 = vadd.f32 %v1040_v33, %v947_v31 }
 0x184   : > { %v1042_v38 = vpop.f32.mrf.mxu0 }
 0x185   : > { %v1047_v39 = vsel %vm202_vm12, %v1045_v36, 0.0  ;;  %v1046_v40 = vadd.f32 %v1042_v38, %v949_v35 }
 0x186   : > { %v1049_v43 = vadd.f32 %v1047_v39, %v761_v37 }
 0x187   : > { %v1048_v44 = vsel %vm203_vm13, %v1046_v40, 0.0 }
 0x188   : > { %v1050_v45 = vadd.f32 %v1048_v44, %v762_v42  ;;  %v1057_v46 = vadd.f32 %v1055_v41, %v1049_v43 }
 0x18a   : > { %v1058_v47 = vadd.f32 %v1055_v41, %v1050_v45  ;;  %v1059_v48 = vmax.f32 %v1057_v46, 0.0 }
 0x18c   : > { %v1060_v49 = vmax.f32 %v1058_v47, 0.0  ;;  %v1064_v50 = vadd.f32 %v1059_v48, %v1396_v1 }
 0x18e   : > { %v1065_v51 = vadd.f32 %v1060_v49, %v1402_v6 }
 0x190   : > { %v1068_v52 = vcombine.low %v1064_v50, %v1065_v51 }
 0x192   : > { %1070 = vst [vmem:[%s163_s24] sm:$0xff] %v1068_v52 }
 0x193   : > { %1259 = shalt.err (!%p1256_p3)
}
 0x194   : > { %s1260_s6 = scalar_lea.hbm %s1084_s28, 128  ;;  %s1264_s9 = scalar_lea.hbm %s1522_s3, 256 }
 0x195   : > { %p1261_p4 = scmp.ne.s32.totalorder %s1084_s28, %s1260_s6  ;;  %p1265_p9 = scmp.lt.s32.totalorder %s1084_s28, %s1522_s3 }
 0x196   : > { %p1266_p10 = scmp.lt.s32.totalorder %s1264_s9, %s1260_s6 }
 0x197   : > { %p1262_p7 = pnand %p1261_p4, %p1377_p5 }
 0x198   : > { %p1267_p11 = por %p1266_p10, %p1265_p9 }
 0x199   : > { %p1263_p8 = pneg %p1262_p7 }
 0x19b   : > { %p1268_p12 = pnand %p1267_p11, %p1263_p8 }
 0x19d   : > { %1271 = shalt.err (!%p1268_p12)
}
 0x19e   : > { %1194 = dma.vmem_to_hbm [thread:$0]  (%p1377_p5), %s1087_s25, 128, %s1084_s28, %s1072_s29  }
 0x19f PF: > { %p1200_p13 = scmp.ge.s32.totalorder %s1306_s15, 2  ;;  %s1098_s17 = sand.u32 1, %s1294_s12  }
 0x1a0   : > { %s1099_s19 = scalar_lea.sflag [#allocation4], %s1098_s17 }
 0x1a1   : > { %p1197_p0 = pnand %p1200_p13, %p1381_p6 }
 0x1a3   : > { %p1198_p1 = pneg %p1197_p0 }
 0x1a5   : > { %1289 = dma.done.wait (%p1198_p1), %s1099_s19, 128  }
 0x1a6   : > { %1291 = vsyncadd (%p1198_p1), %s1099_s19, 4294967168  ;;  %p13_p2 = scmp.ge.s32.totalorder %s1364_s18, 4   ;;  %s1527_s12 = smov %s1298_s13 }
 0x1a7   : > { %s1528_s13 = smov %s1302_s14  ;;  %s1529_s14 = smov %s1375_s21 }
 0x1a8   : > { %s1530_s15 = smov %s1364_s18  ;;  %15 = sbr.rel (!%p13_p2) target bundleno = 3 (0x3), region = 75 }
 0x1ad   :  { %1104 = vsyncpa [#allocation4], 1 }
 0x1ae   :  { %1106 = vsyncpa [#allocation4 + $0x1], 1 }

</bundles_post_ra>
